<compile_context>
chip_gen: v6e
topology: v6e:2x2x1
jax: 0.10.0
libtpu: 0.0.40
codegen_flags: <defaults>
</compile_context>

<pallas_src>
import jax
import jax.numpy as jnp
from jax import lax
from jax.experimental import pallas as pl
from jax.experimental.pallas import tpu as pltpu

EPS = 1e-8  # torch.nn.CosineSimilarity default eps


def _round_up(v, m):
    return ((v + m - 1) // m) * m


def _chip_info():
    """Return (num_tensorcores, vmem_budget_bytes) from the device kind."""
    kind = ""
    try:
        kind = jax.devices()[0].device_kind.lower()
    except Exception:
        pass
    if "v7" in kind:
        # v7x: 2 TensorCores/chip, 64 MiB physical VMEM per TC -> leave headroom.
        return 2, 48 * 1024 * 1024
    # v5e / v6e: 1 TensorCore, 128 MiB physical VMEM.
    return 1, 64 * 1024 * 1024


def _similarity_kernel(x_ref, y_ref, ix_ref, iy_ref, o_ref):
    # x_ref: (TM, Hp)  y_ref: (TN, Hp)  ix_ref: (TM, 1) f32  iy_ref: (1, TN) f32
    # Pairwise dot products: NT matmul on the MXU, native input dtype, f32 acc.
    dots = lax.dot_general(
        x_ref[...], y_ref[...], (((1,), (1,)), ((), ())),
        preferred_element_type=jnp.float32,
    )  # (TM, TN)
    # Epilogue: two broadcast multiplies; 1/temp is already folded into ix.
    o_ref[...] = (dots * ix_ref[...] * iy_ref[...]).astype(o_ref.dtype)


def similarity(x, y, temp, *, tm_max=512, tn_max=1024):
    """Pallas implementation of Similarity.forward.

    Accepts the SimCSE broadcast pattern x: (B, 1, H), y: (1, B, H) (or plain
    2-D (B, H) inputs) and returns the (Bx, By) scaled cosine-similarity matrix.
    """
    if x.ndim == 3 and y.ndim == 3:
        assert x.shape[1] == 1 and y.shape[0] == 1, "expected (B,1,H) and (1,B,H)"
        x2 = x[:, 0, :]          # (Bx, H)
        y2 = y[0, :, :]          # (By, H)
    else:
        x2, y2 = x, y

    Bx, H = x2.shape
    By, Hy = y2.shape
    assert H == Hy, "hidden dims must match"

    n_cores, vmem_budget = _chip_info()
    itemsize = jnp.dtype(x2.dtype).itemsize

    Hp = _round_up(H, 128)

    # --- tile selection: minimize batch padding, keep tiles lane-dense ------
    def pick(B, max_tile, granule, min_blocks=1):
        nblk = max(min_blocks, pl.cdiv(B, max_tile))
        return _round_up(pl.cdiv(B, nblk), granule)

    # On v7x, force >= 2 row blocks so both TensorCores get work (the row axis
    # is the megacore-sharded 'parallel' axis).
    row_min_blocks = 2 if (n_cores > 1 and Bx >= 16) else 1
    TM = pick(Bx, tm_max, 8, row_min_blocks)
    TN = pick(By, tn_max, 128)

    # --- shrink tiles until the double-buffered working set fits VMEM -------
    def vmem_bytes(tm, tn):
        return (2 * (tm + tn) * Hp * itemsize   # x / y input double buffers
                + 2 * (tm + tn) * 4             # inv-norm vector buffers
                + 2 * tm * tn * 4)              # f32 output double buffer

    while vmem_bytes(TM, TN) > vmem_budget and (TN > 128 or TM > 8):
        if TN > 128:
            TN = max(128, _round_up(TN // 2, 128))
        else:
            TM = max(8, _round_up(TM // 2, 8))
    # TODO(synk): for extremely large Hp a third (K) grid axis with an f32
    # accumulator + partial sum-of-squares would cap VMEM independent of H.

    Bxp = _round_up(Bx, TM)
    Byp = _round_up(By, TN)

    # Zero padding is semantically safe: padded rows/cols have norm 0 -> the
    # eps clamp makes their outputs exactly 0, and they are sliced off below;
    # padded H columns contribute 0 to every dot product. Skip the copy when
    # shapes are already tile-aligned.
    if (Bxp, Hp) != (Bx, H):
        x2 = jnp.pad(x2, ((0, Bxp - Bx), (0, Hp - H)))
    if (Byp, Hp) != (By, H):
        y2 = jnp.pad(y2, ((0, Byp - By), (0, Hp - H)))

    # Hoisted norms (one fused XLA reduce each); reciprocal + temp folded in.
    xf = x2.astype(jnp.float32)
    yf = y2.astype(jnp.float32)
    nx = jnp.sqrt(jnp.sum(xf * xf, axis=-1, keepdims=True))        # (Bxp, 1)
    ny = jnp.sqrt(jnp.sum(yf * yf, axis=-1, keepdims=True)).T      # (1, Byp)
    inv_x = (1.0 / jnp.maximum(nx, EPS)) * (1.0 / float(temp))     # (Bxp, 1) f32
    inv_y = 1.0 / jnp.maximum(ny, EPS)                             # (1, Byp) f32

    grid = (Bxp // TM, Byp // TN)

    # Advisory cost: x streamed once (block index constant across j), y is
    # re-streamed once per row block, output written once.
    cost = pl.CostEstimate(
        flops=2 * Bxp * Byp * Hp,
        transcendentals=0,
        bytes_accessed=(Bxp * Hp + grid[0] * Byp * Hp) * itemsize
        + Bxp * Byp * 4 + (Bxp + Byp) * 4,
    )

    vmem_limit = int(min(vmem_budget,
                         max(32 * 1024 * 1024, vmem_bytes(TM, TN) + (4 << 20))))

    out = pl.pallas_call(
        _similarity_kernel,
        out_shape=jax.ShapeDtypeStruct((Bxp, Byp), jnp.float32),
        grid_spec=pltpu.PrefetchScalarGridSpec(
            num_scalar_prefetch=0,
            grid=grid,
            in_specs=[
                pl.BlockSpec((TM, Hp), lambda i, j: (i, 0)),
                pl.BlockSpec((TN, Hp), lambda i, j: (j, 0)),
                pl.BlockSpec((TM, 1), lambda i, j: (i, 0)),
                pl.BlockSpec((1, TN), lambda i, j: (0, j)),
            ],
            out_specs=pl.BlockSpec((TM, TN), lambda i, j: (i, j)),
        ),
        compiler_params=pltpu.CompilerParams(
            # Every (i, j) tile is independent now (no scratch carried across
            # the column axis), so both axes can be megacore-sharded.
            dimension_semantics=("parallel", "parallel"),
            vmem_limit_bytes=vmem_limit,
        ),
        cost_estimate=cost,
    )(x2, y2, inv_x, inv_y)

    return out[:Bx, :By]


def similarity_ref(x, y, temp):
    """Pure-JAX reference reproducing torch.nn.CosineSimilarity(dim=-1) / temp."""
    xb, yb = jnp.broadcast_arrays(x, y)
    dots = jnp.sum(xb * yb, axis=-1)
    nx = jnp.sqrt(jnp.sum(xb * xb, axis=-1))
    ny = jnp.sqrt(jnp.sum(yb * yb, axis=-1))
    return dots / jnp.maximum(nx * ny, EPS) / temp


if __name__ == "__main__":
    key = jax.random.PRNGKey(0)
    kx, ky = jax.random.split(key)

    B, H = 8, 32
    temp = 0.05

    # SimCSE-style broadcast inputs: (B, 1, H) and (1, B, H)
    x = jax.random.normal(kx, (B, 1, H), dtype=jnp.float32)
    y = jax.random.normal(ky, (1, B, H), dtype=jnp.float32)

    out = jax.block_until_ready(similarity(x, y, temp))

    ref = similarity_ref(x, y, temp)
    assert out.shape == (B, B), out.shape
    assert jnp.allclose(out, ref, atol=1e-4, rtol=1e-4), "mismatch vs reference"

    print("KERNEL_OK")
</pallas_src>

<mosaic_0001>
module attributes {stable_mosaic.version = 11 : i64} {
  func.func @_similarity_kernel(%arg0: i32, %arg1: i32, %arg2: memref<8x128xf32, #tpu.memory_space<vmem>>, %arg3: memref<128x128xf32, #tpu.memory_space<vmem>>, %arg4: memref<8x1xf32, #tpu.memory_space<vmem>>, %arg5: memref<1x128xf32, #tpu.memory_space<vmem>>, %arg6: memref<8x128xf32, #tpu.memory_space<vmem>>) attributes {dimension_semantics = [#tpu.dimension_semantics<parallel>, #tpu.dimension_semantics<parallel>], iteration_bounds = array<i64: 1, 1>, scalar_prefetch = 0 : i64, scratch_operands = 0 : i64, tpu.core_type = #tpu.core_type<tc>, window_params = [{transform_indices = @transform_0, window_bounds = array<i64: 8, 128>}, {transform_indices = @transform_1, window_bounds = array<i64: 128, 128>}, {transform_indices = @transform_2, window_bounds = array<i64: 8, 1>}, {transform_indices = @transform_3, window_bounds = array<i64: 1, 128>}, {transform_indices = @transform_4, window_bounds = array<i64: 8, 128>}]} {
    %c0 = arith.constant 0 : index
    %c0_0 = arith.constant 0 : index
    %0 = vector.load %arg2[%c0, %c0_0] : memref<8x128xf32, #tpu.memory_space<vmem>>, vector<8x128xf32>
    %c0_1 = arith.constant 0 : index
    %c0_2 = arith.constant 0 : index
    %1 = vector.load %arg3[%c0_1, %c0_2] : memref<128x128xf32, #tpu.memory_space<vmem>>, vector<128x128xf32>
    %cst = arith.constant dense<0.000000e+00> : vector<8x128xf32>
    %2 = tpu.matmul %0, %1, %cst {dimension_numbers = #tpu.dot_dimension_numbers<[1], [1], [0], [0], [0, 0, 1, 0], [], []>} : vector<8x128xf32>, vector<128x128xf32>, vector<8x128xf32> -> vector<8x128xf32>
    %c0_3 = arith.constant 0 : index
    %c0_4 = arith.constant 0 : index
    %3 = vector.load %arg4[%c0_3, %c0_4] : memref<8x1xf32, #tpu.memory_space<vmem>>, vector<8x1xf32>
    %4 = vector.broadcast %3 : vector<8x1xf32> to vector<8x128xf32>
    %5 = arith.mulf %2, %4 : vector<8x128xf32>
    %c0_5 = arith.constant 0 : index
    %c0_6 = arith.constant 0 : index
    %6 = vector.load %arg5[%c0_5, %c0_6] : memref<1x128xf32, #tpu.memory_space<vmem>>, vector<1x128xf32>
    %7 = vector.broadcast %6 : vector<1x128xf32> to vector<8x128xf32>
    %8 = arith.mulf %5, %7 : vector<8x128xf32>
    %c0_7 = arith.constant 0 : index
    %c0_8 = arith.constant 0 : index
    %9 = vector.load %arg6[%c0_7, %c0_8] : memref<8x128xf32, #tpu.memory_space<vmem>>, vector<8x128xf32>
    tpu.vector_store %arg6[%c0_7, %c0_8], %8 {strides = array<i32>} : memref<8x128xf32, #tpu.memory_space<vmem>>, vector<8x128xf32>,
    return
  }
  func.func @transform_0(%arg0: i32, %arg1: i32) -> (i32, i32) {
    %c0_i32 = arith.constant 0 : i32
    %c0_i32_0 = arith.constant 0 : i32
    return %arg0, %c0_i32 : i32, i32
  }
  func.func @transform_1(%arg0: i32, %arg1: i32) -> (i32, i32) {
    %c0_i32 = arith.constant 0 : i32
    %c0_i32_0 = arith.constant 0 : i32
    return %arg1, %c0_i32 : i32, i32
  }
  func.func @transform_2(%arg0: i32, %arg1: i32) -> (i32, i32) {
    %c0_i32 = arith.constant 0 : i32
    %c0_i32_0 = arith.constant 0 : i32
    return %arg0, %c0_i32 : i32, i32
  }
  func.func @transform_3(%arg0: i32, %arg1: i32) -> (i32, i32) {
    %c0_i32 = arith.constant 0 : i32
    %c0_i32_0 = arith.constant 0 : i32
    return %c0_i32, %arg1 : i32, i32
  }
  func.func @transform_4(%arg0: i32, %arg1: i32) -> (i32, i32) {
    %c0_i32 = arith.constant 0 : i32
    return %arg0, %arg1 : i32, i32
  }
}

</mosaic_0001>

<bundles_post_ra>
// kernel: tpu_custom_call.1
= control target key start
LH: loop header
LB: loop body
LE: loop exit
PB: predicated region body
PF: predicated region fallthrough
CT: control target
= control target key end

     0   :  { %9 = vsyncpa [#allocation3], 0  ;;  %s302_s0 = inlined_call_operand.vmem [shape: f32[8,128], index: 0, kind: input, shape index: {}]   ;;  %s303_s1 = inlined_call_operand.hbm [shape: f32[128,128], index: 1, kind: input, shape index: {}]   ;;  %s304_s2 = inlined_call_operand.vmem [shape: f32[8,1], index: 2, kind: input, shape index: {}]   ;;  %s305_s3 = inlined_call_operand.vmem [shape: f32[1,128], index: 3, kind: input, shape index: {}]   ;;  %s306_s4 = inlined_call_operand.hbm [shape: f32[8,128], index: 4, kind: output, shape index: {}]  }
   0x1   :  { %10 = vsyncpa [#allocation4], 0  ;;  %s255_s15 = smov [#allocation2]  }
   0x2   :  { %s18_s16 = sshll.u32 %s255_s15, 4  ;;  %s19_s16 = int_to_ptr.vmem [resolvable:$true] %s18_s16 }
   0x3   :  { %s219_s17 = scalar_lea.vmem %s19_s16, 2048  ;;  %p224_p1 = scmp.lt.s32.totalorder %s19_s16, %s19_s16 }
   0x4   :  { %p220_p0 = scmp.ne.s32.totalorder %s19_s16, %s219_s17  ;;  %p225_p2 = scmp.lt.s32.totalorder %s219_s17, %s219_s17 }
   0x6   :  { %p226_p3 = por %p225_p2, %p224_p1 }
   0x8   :  { %p227_p4 = pnand %p226_p3, %p220_p0 }
   0xa   :  { %230 = shalt.err (!%p227_p4)
}
   0xb   :  { %s256_s18 = smov 128   ;;  %s257_s19 = smov 8  }
   0xc   :  { %24 = dma.hbm_to_vmem [thread:$0]  %s303_s1, 2048, %s19_s16, [#allocation3], %s256_s18, %s256_s18, %s257_s19  }
   0xd   :  { %251 = dma.done.wait [#allocation3], 2048  }
   0xe   :  { %252 = vsyncadd [#allocation3], 4294965248  ;;  %v258_v0 = vmov 0.0   ;;  %vm259_vm0 = vmmov 0   ;;  %v260_v1 = vmov 0   ;;  %v48_v2 = vld [vmem:[#allocation2 + $0x78] sm:$0xff] }
   0xf   :  { %168 = vmatprep.subr.mxu0 %v258_v0  ;;  %200 = vmatprep.mubr.msk.f32.mxu0 %vm259_vm0, %v258_v0  ;;  %v47_v3 = vld [vmem:[#allocation2 + $0x70] sm:$0xff]  ;;  %v119_v4 = vld [vmem:[%s304_s2] sm:$0xff]  ;;  %v46_v5 = vld [vmem:[#allocation2 + $0x68] sm:$0xff]  ;;  %s261_s26 = smov [#allocation5]  }
  0x10   :  { %210 = vset.pattern.permute.xlu0 %v260_v1  ;;  %169 = vmatpush3.xpose.msra.mxu0 %v48_v2  ;;  %v45_v6 = vld [vmem:[#allocation2 + $0x60] sm:$0xff]  ;;  %v44_v7 = vld [vmem:[#allocation2 + $0x58] sm:$0xff]  ;;  %v43_v8 = vld [vmem:[#allocation2 + $0x50] sm:$0xff]  ;;  %s141_s27 = sshll.u32 %s261_s26, 4  ;;  %s142_s27 = int_to_ptr.vmem [resolvable:$true] %s141_s27 }
  0x11   :  { %170 = vmatprep.subr.mxu0 %v258_v0  ;;  %122 = vperm.xlu0 %210, %v119_v4   ;;  %v42_v9 = vld [vmem:[#allocation2 + $0x48] sm:$0xff]  ;;  %v41_v10 = vld [vmem:[#allocation2 + $0x40] sm:$0xff]  ;;  %v40_v11 = vld [vmem:[#allocation2 + $0x38] sm:$0xff]  ;;  %s231_s28 = scalar_lea.vmem %s142_s27, 128  ;;  %p236_p6 = scmp.lt.s32.totalorder %s142_s27, %s142_s27 }
  0x12   :  { %v39_v12 = vld [vmem:[#allocation2 + $0x30] sm:$0xff]  ;;  %v38_v13 = vld [vmem:[#allocation2 + $0x28] sm:$0xff]  ;;  %v37_v14 = vld [vmem:[#allocation2 + $0x20] sm:$0xff]  ;;  %p232_p5 = scmp.ne.s32.totalorder %s142_s27, %s231_s28  ;;  %p237_p7 = scmp.lt.s32.totalorder %s231_s28, %s231_s28 }
  0x13   :  { %v36_v15 = vld [vmem:[#allocation2 + $0x18] sm:$0xff]  ;;  %v35_v16 = vld [vmem:[#allocation2 + $0x10] sm:$0xff]  ;;  %v34_v17 = vld [vmem:[#allocation2 + $0x8] sm:$0xff] }
  0x14   :  { %171 = vmatpush3.xpose.msra.mxu0 %v47_v3  ;;  %v33_v18 = vld [vmem:[#allocation2] sm:$0xff]  ;;  %p238_p8 = por %p237_p7, %p236_p6 }
  0x15   :  { %172 = vmatprep.subr.mxu0 %v258_v0  ;;  %v32_v19 = vld [vmem:[%s302_s0] sm:$0xff] }
  0x16   :  { %v150_v22 = vld [vmem:[%s305_s3] ss:$0 sm:$0xff]  ;;  %p239_p9 = pnand %p238_p8, %p232_p5 }
  0x18   :  { %173 = vmatpush3.xpose.msra.mxu0 %v46_v5 }
  0x19   :  { %174 = vmatprep.subr.mxu0 %v258_v0 }
  0x1c   :  { %175 = vmatpush3.xpose.msra.mxu0 %v45_v6 }
  0x1d   :  { %176 = vmatprep.subr.mxu0 %v258_v0 }
  0x20   :  { %177 = vmatpush3.xpose.msra.mxu0 %v44_v7 }
  0x21   :  { %178 = vmatprep.subr.mxu0 %v258_v0 }
  0x24   :  { %179 = vmatpush3.xpose.msra.mxu0 %v43_v8 }
  0x25   :  { %180 = vmatprep.subr.mxu0 %v258_v0 }
  0x28   :  { %181 = vmatpush3.xpose.msra.mxu0 %v42_v9 }
  0x29   :  { %182 = vmatprep.subr.mxu0 %v258_v0 }
  0x2c   :  { %183 = vmatpush3.xpose.msra.mxu0 %v41_v10 }
  0x2d   :  { %184 = vmatprep.subr.mxu0 %v258_v0 }
  0x30   :  { %185 = vmatpush3.xpose.msra.mxu0 %v40_v11 }
  0x31   :  { %186 = vmatprep.subr.mxu0 %v258_v0 }
  0x34   :  { %187 = vmatpush3.xpose.msra.mxu0 %v39_v12 }
  0x35   :  { %188 = vmatprep.subr.mxu0 %v258_v0 }
  0x38   :  { %189 = vmatpush3.xpose.msra.mxu0 %v38_v13 }
  0x39   :  { %190 = vmatprep.subr.mxu0 %v258_v0 }
  0x3c   :  { %191 = vmatpush3.xpose.msra.mxu0 %v37_v14 }
  0x3d   :  { %192 = vmatprep.subr.mxu0 %v258_v0 }
  0x40   :  { %193 = vmatpush3.xpose.msra.mxu0 %v36_v15 }
  0x41   :  { %194 = vmatprep.subr.mxu0 %v258_v0 }
  0x44   :  { %195 = vmatpush3.xpose.msra.mxu0 %v35_v16 }
  0x45   :  { %196 = vmatprep.subr.mxu0 %v258_v0 }
  0x48   :  { %197 = vmatpush3.xpose.msra.mxu0 %v34_v17 }
  0x49   :  { %198 = vmatprep.subr.mxu0 %v258_v0 }
  0x4c   :  { %199 = vmatpush3.xpose.msra.mxu0 %v33_v18 }
  0x4f   :  { %201 = vmatmul.mubr.f32.vlgmr.msra.gmra.mxu0 %v32_v19 }
  0x8c   :  { %v123_v20 = vpop.permute.xlu0 %122 }
 0x10f   :  { %v115_v21 = vpop.f32.mrf.mxu0 }
 0x110   :  { %v125_v23 = vmul.f32 %v123_v20, %v115_v21 }
 0x111   :  { %v202_v24 = vpop.f32.mrf.mxu0 }
 0x112   :  { %v133_v25 = vmul.f32 %v150_v22, %v125_v23 }
 0x114   :  { %134 = vst [vmem:[#allocation5] sm:$0xff] %v133_v25 }
 0x115   :  { %242 = shalt.err (!%p239_p9)
}
 0x116   :  { %144 = dma.vmem_to_hbm [thread:$0]  %s142_s27, 128, %s306_s4, [#allocation4]  }
 0x117   :  { %253 = dma.done.wait [#allocation4], 128  }
 0x118   :  { %254 = vsyncadd [#allocation4], 4294967168 }
 0x119   :  { %148 = vsyncpa [#allocation3], 1 }
 0x11a   :  { %149 = vsyncpa [#allocation4], 1 }

</bundles_post_ra>
